<compile_context>
chip_gen: v7x
topology: tpu7x:2x2x1
jax: 0.10.0
libtpu: 0.0.40
codegen_flags: <defaults>
</compile_context>

<pallas_src>
import jax
import jax.numpy as jnp
from jax.experimental import pallas as pl
from jax.experimental.pallas import tpu as pltpu

# Pendulum-v1 dimensions (hardcoded so no gym dependency is needed).
STATE_DIM = 3      # env.observation_space.shape[0]
ACTION_DIM = 1     # env.action_space.shape[0]
HIDDEN_DIM = 256
IN_DIM = STATE_DIM + ACTION_DIM


# ---------------------------------------------------------------------------
# Kernel variant A: v6e / v7x (and default).
# ---------------------------------------------------------------------------
def value_net_kernel_mxu(state_ref, action_ref, w1s_ref, w1a_ref, b1_ref,
                         w2_ref, b2_ref, w3p_ref, b3_ref, out_ref):
    """
    state_ref : (TB, 3)   f32
    action_ref: (TB, 1)   f32
    w1s_ref   : (3, H)    bf16  fc1 weight rows for the state features (MXU)
    w1a_ref   : (1, H)    f32   fc1 weight row for the action (VPU rank-1)
    b1_ref    : (1, H)    bf16
    w2_ref    : (H, H)    bf16
    b2_ref    : (1, H)    bf16
    w3p_ref   : (H, 128)  bf16  fc3 weight zero-padded to 128 lanes
    b3_ref    : (1, 1)    f32   SMEM scalar
    out_ref   : (TB, 1)   f32
    """
    # fc1: K=3 matmul on the MXU (f32 accumulate) + VPU rank-1 action update.
    h1 = jnp.dot(state_ref[...].astype(jnp.bfloat16), w1s_ref[...],
                 preferred_element_type=jnp.float32)
    h1 = h1 + action_ref[...] * w1a_ref[...]            # (TB,1)*(1,H) outer prod
    # bf16 epilogue (bf16 VALUs on v6e/v7x): bias add + ReLU feed fc2 directly.
    h1 = jnp.maximum(h1.astype(jnp.bfloat16) + b1_ref[...], 0)

    # fc2: dominant (H x H) matmul, bf16 operands, f32 accumulate.
    h2 = jnp.dot(h1, w2_ref[...], preferred_element_type=jnp.float32)
    h2 = jnp.maximum(h2.astype(jnp.bfloat16) + b2_ref[...], 0)

    # fc3: zero-padded MXU matmul; lane 0 carries the value. Keeps the 256-lane
    # reduction off the 2-XLU v6e/v7x chips.
    h3 = jnp.dot(h2, w3p_ref[...], preferred_element_type=jnp.float32)
    out_ref[...] = h3[:, 0:1] + b3_ref[0, 0]


# ---------------------------------------------------------------------------
# Kernel variant B: v5e / v5p (MXU is the binding unit; no bf16 VPU).
# ---------------------------------------------------------------------------
def value_net_kernel_v5(state_ref, action_ref, w1_ref, b1_ref,
                        w2_ref, b2_ref, w3_ref, b3_ref, out_ref):
    """
    state_ref : (TB, 3)  f32
    action_ref: (TB, 1)  f32
    w1_ref    : (4, H)   f32   full fc1 weight (applied as VPU rank-1 updates)
    b1_ref    : (1, H)   f32
    w2_ref    : (H, H)   bf16
    b2_ref    : (1, H)   f32
    w3_ref    : (1, H)   f32   fc3 weight as a row
    b3_ref    : (1, 1)   f32   SMEM scalar
    out_ref   : (TB, 1)  f32
    """
    s = state_ref[...]
    a = action_ref[...]
    # fc1 as 4 rank-1 broadcast-FMA updates in f32 (stays off the binding MXU).
    h1 = b1_ref[...] + a[:, 0:1] * w1_ref[STATE_DIM:STATE_DIM + 1, :]
    for k in range(STATE_DIM):                           # unrolled at trace time
        h1 = h1 + s[:, k:k + 1] * w1_ref[k:k + 1, :]
    h1 = jnp.maximum(h1, 0.0)

    # fc2: the only MXU matmul (bf16 operands, f32 accumulate), f32 epilogue.
    h2 = jnp.dot(h1.astype(jnp.bfloat16), w2_ref[...],
                 preferred_element_type=jnp.float32) + b2_ref[...]
    h2 = jnp.maximum(h2, 0.0)

    # fc3: VPU broadcast-multiply + XLU lane reduction (3 XLUs on v5e).
    out_ref[...] = (jnp.sum(h2 * w3_ref[...], axis=-1, keepdims=True)
                    + b3_ref[0, 0])


# ---------------------------------------------------------------------------
# Wrapper
# ---------------------------------------------------------------------------
def _round_up(x, m):
    return ((x + m - 1) // m) * m


def _detect_variant():
    try:
        kind = jax.devices()[0].device_kind.lower()
    except Exception:
        return "mxu"
    return "v5" if "v5" in kind else "mxu"


def value_network_forward(state, action, params, *, batch_tile=4096,
                          variant=None):
    """state: (B, STATE_DIM) f32, action: (B, ACTION_DIM) f32 -> (B, 1) f32."""
    w1, b1, w2, b2, w3, b3 = params            # canonical f32 parameters
    B = state.shape[0]
    hidden = w1.shape[1]
    if variant is None:
        variant = _detect_variant()

    # ---- batch tiling -------------------------------------------------------
    b8 = _round_up(max(B, 1), 8)               # sublane multiple
    tb = min(batch_tile, b8)
    # Prefer >= 2 grid steps so dimension_semantics=("parallel",) can shard the
    # batch across v7x's two TensorCores (costs one extra ~0.35us step on
    # single-TC chips, negligible).
    if 16 <= b8 <= batch_tile:
        tb = _round_up(pl.cdiv(b8, 2), 8)
    bp = _round_up(b8, tb)
    grid = (bp // tb,)

    state = state.astype(jnp.float32)
    action = action.astype(jnp.float32)
    if bp != B:
        state = jnp.pad(state, ((0, bp - B), (0, 0)))
        action = jnp.pad(action, ((0, bp - B), (0, 0)))

    state_dim = state.shape[1]
    action_dim = action.shape[1]

    common = dict(
        out_shape=jax.ShapeDtypeStruct((bp, 1), jnp.float32),
        grid=grid,
        out_specs=pl.BlockSpec((tb, 1), lambda i: (i, 0)),
        compiler_params=pltpu.CompilerParams(
            dimension_semantics=("parallel",),     # megacore sharding on v7x
            vmem_limit_bytes=48 * 1024 * 1024,     # headroom for TB up to 8192
        ),
    )

    # NOTE: in a real deployment the per-variant weight casts/pads below would
    # be done once outside the hot path; here they are tiny XLA ops per call.
    if variant == "v5":
        out = pl.pallas_call(
            value_net_kernel_v5,
            in_specs=[
                pl.BlockSpec((tb, state_dim), lambda i: (i, 0)),     # state
                pl.BlockSpec((tb, action_dim), lambda i: (i, 0)),    # action
                pl.BlockSpec((state_dim + action_dim, hidden),
                             lambda i: (0, 0)),                      # w1 f32
                pl.BlockSpec((1, hidden), lambda i: (0, 0)),         # b1
                pl.BlockSpec((hidden, hidden), lambda i: (0, 0)),    # w2 bf16
                pl.BlockSpec((1, hidden), lambda i: (0, 0)),         # b2
                pl.BlockSpec((1, hidden), lambda i: (0, 0)),         # w3 row
                pl.BlockSpec(memory_space=pltpu.MemorySpace.SMEM),   # b3
            ],
            **common,
        )(state, action,
          w1, b1,
          w2.astype(jnp.bfloat16), b2,
          w3.T, b3)
    else:
        # fc3 weight zero-padded to a full 128-lane tile (lane 0 is real).
        w3_pad = jnp.pad(w3, ((0, 0), (0, 128 - w3.shape[1])))
        out = pl.pallas_call(
            value_net_kernel_mxu,
            in_specs=[
                pl.BlockSpec((tb, state_dim), lambda i: (i, 0)),     # state
                pl.BlockSpec((tb, action_dim), lambda i: (i, 0)),    # action
                pl.BlockSpec((state_dim, hidden), lambda i: (0, 0)), # w1s bf16
                pl.BlockSpec((1, hidden), lambda i: (0, 0)),         # w1a f32
                pl.BlockSpec((1, hidden), lambda i: (0, 0)),         # b1 bf16
                pl.BlockSpec((hidden, hidden), lambda i: (0, 0)),    # w2 bf16
                pl.BlockSpec((1, hidden), lambda i: (0, 0)),         # b2 bf16
                pl.BlockSpec((hidden, 128), lambda i: (0, 0)),       # w3 padded
                pl.BlockSpec(memory_space=pltpu.MemorySpace.SMEM),   # b3
            ],
            **common,
        )(state, action,
          w1[:state_dim].astype(jnp.bfloat16),
          w1[state_dim:],
          b1.astype(jnp.bfloat16),
          w2.astype(jnp.bfloat16),
          b2.astype(jnp.bfloat16),
          w3_pad.astype(jnp.bfloat16),
          b3)

    return out[:B]


def init_params(key, state_dim=STATE_DIM, action_dim=ACTION_DIM,
                hidden_dim=HIDDEN_DIM):
    """Deterministic init matching PyTorch nn.Linear default U(-1/sqrt(fan_in), ...)."""
    in1 = state_dim + action_dim
    k = jax.random.split(key, 6)

    def uni(k_, shape, fan_in):
        bound = 1.0 / jnp.sqrt(fan_in)
        return jax.random.uniform(k_, shape, jnp.float32, -bound, bound)

    w1 = uni(k[0], (in1, hidden_dim), in1)           # (in, H)
    b1 = uni(k[1], (1, hidden_dim), in1)
    w2 = uni(k[2], (hidden_dim, hidden_dim), hidden_dim)
    b2 = uni(k[3], (1, hidden_dim), hidden_dim)
    w3 = uni(k[4], (hidden_dim, 1), hidden_dim)      # (H, 1)
    b3 = uni(k[5], (1, 1), hidden_dim)
    return (w1, b1, w2, b2, w3, b3)


def reference_forward(state, action, params):
    """Pure-f32 JAX reference with the exact PyTorch ValueNetwork semantics."""
    w1, b1, w2, b2, w3, b3 = params
    x = jnp.concatenate([state, action], axis=-1)
    h1 = jax.nn.relu(x @ w1 + b1)
    h2 = jax.nn.relu(h1 @ w2 + b2)
    return h2 @ w3 + b3


if __name__ == "__main__":
    key = jax.random.PRNGKey(0)
    k_param, k_state, k_action = jax.random.split(key, 3)

    B = 8
    state = jax.random.normal(k_state, (B, STATE_DIM), jnp.float32)
    action = jax.random.normal(k_action, (B, ACTION_DIM), jnp.float32)

    params = init_params(k_param)

    out = value_network_forward(state, action, params)
    out = jax.block_until_ready(out)

    ref = reference_forward(state, action, params)
    assert out.shape == (B, 1), out.shape
    # bf16 matmul operands / f32 accumulation deviate from pure-f32 PyTorch at
    # the ~1e-3 absolute level for this net; 2e-2 is a wide safety margin.
    assert jnp.allclose(out, ref, atol=2e-2, rtol=2e-2), (out, ref)

    print("KERNEL_OK")
</pallas_src>

<mosaic_0001>
module attributes {stable_mosaic.version = 11 : i64} {
  func.func @value_net_kernel_mxu(%arg0: i32, %arg1: memref<8x3xf32, #tpu.memory_space<vmem>>, %arg2: memref<8x1xf32, #tpu.memory_space<vmem>>, %arg3: memref<3x256xbf16, #tpu.memory_space<vmem>>, %arg4: memref<1x256xf32, #tpu.memory_space<vmem>>, %arg5: memref<1x256xbf16, #tpu.memory_space<vmem>>, %arg6: memref<256x256xbf16, #tpu.memory_space<vmem>>, %arg7: memref<1x256xbf16, #tpu.memory_space<vmem>>, %arg8: memref<256x128xbf16, #tpu.memory_space<vmem>>, %arg9: memref<1x1xf32, #tpu.memory_space<smem>>, %arg10: memref<8x1xf32, #tpu.memory_space<vmem>>) attributes {dimension_semantics = [#tpu.dimension_semantics<parallel>], iteration_bounds = array<i64: 1>, scalar_prefetch = 0 : i64, scratch_operands = 0 : i64, tpu.core_type = #tpu.core_type<tc>, window_params = [{transform_indices = @transform_0, window_bounds = array<i64: 8, 3>}, {transform_indices = @transform_1, window_bounds = array<i64: 8, 1>}, {pipeline_mode = #tpu.pipeline_mode<synchronous>, transform_indices = @transform_2, window_bounds = array<i64: 3, 256>}, {pipeline_mode = #tpu.pipeline_mode<synchronous>, transform_indices = @transform_3, window_bounds = array<i64: 1, 256>}, {pipeline_mode = #tpu.pipeline_mode<synchronous>, transform_indices = @transform_4, window_bounds = array<i64: 1, 256>}, {pipeline_mode = #tpu.pipeline_mode<synchronous>, transform_indices = @transform_5, window_bounds = array<i64: 256, 256>}, {pipeline_mode = #tpu.pipeline_mode<synchronous>, transform_indices = @transform_6, window_bounds = array<i64: 1, 256>}, {pipeline_mode = #tpu.pipeline_mode<synchronous>, transform_indices = @transform_7, window_bounds = array<i64: 256, 128>}, {transform_indices = @transform_8, window_bounds = array<i64: 1, 1>}, {transform_indices = @transform_9, window_bounds = array<i64: 8, 1>}]} {
    %c0 = arith.constant 0 : index
    %c0_0 = arith.constant 0 : index
    %0 = vector.load %arg1[%c0, %c0_0] : memref<8x3xf32, #tpu.memory_space<vmem>>, vector<8x3xf32>
    %1 = arith.truncf %0 : vector<8x3xf32> to vector<8x3xbf16>
    %c0_1 = arith.constant 0 : index
    %c0_2 = arith.constant 0 : index
    %2 = vector.load %arg3[%c0_1, %c0_2] : memref<3x256xbf16, #tpu.memory_space<vmem>>, vector<3x256xbf16>
    %cst = arith.constant dense<0.000000e+00> : vector<8x256xf32>
    %3 = tpu.matmul %1, %2, %cst {dimension_numbers = #tpu.dot_dimension_numbers<[1], [0], [0], [1], [0, 0, 1, 1], [], []>} : vector<8x3xbf16>, vector<3x256xbf16>, vector<8x256xf32> -> vector<8x256xf32>
    %c0_3 = arith.constant 0 : index
    %c0_4 = arith.constant 0 : index
    %4 = vector.load %arg2[%c0_3, %c0_4] : memref<8x1xf32, #tpu.memory_space<vmem>>, vector<8x1xf32>
    %c0_5 = arith.constant 0 : index
    %c0_6 = arith.constant 0 : index
    %5 = vector.load %arg4[%c0_5, %c0_6] : memref<1x256xf32, #tpu.memory_space<vmem>>, vector<1x256xf32>
    %6 = vector.broadcast %4 : vector<8x1xf32> to vector<8x256xf32>
    %7 = vector.broadcast %5 : vector<1x256xf32> to vector<8x256xf32>
    %8 = arith.mulf %6, %7 : vector<8x256xf32>
    %9 = arith.addf %3, %8 : vector<8x256xf32>
    %10 = arith.truncf %9 : vector<8x256xf32> to vector<8x256xbf16>
    %c0_7 = arith.constant 0 : index
    %c0_8 = arith.constant 0 : index
    %11 = vector.load %arg5[%c0_7, %c0_8] : memref<1x256xbf16, #tpu.memory_space<vmem>>, vector<1x256xbf16>
    %12 = vector.broadcast %11 : vector<1x256xbf16> to vector<8x256xbf16>
    %13 = arith.addf %10, %12 : vector<8x256xbf16>
    %cst_9 = arith.constant 0.000000e+00 : bf16
    %14 = vector.broadcast %cst_9 : bf16 to vector<8x256xbf16>
    %15 = arith.maximumf %13, %14 : vector<8x256xbf16>
    %c0_10 = arith.constant 0 : index
    %c0_11 = arith.constant 0 : index
    %16 = vector.load %arg6[%c0_10, %c0_11] : memref<256x256xbf16, #tpu.memory_space<vmem>>, vector<256x256xbf16>
    %cst_12 = arith.constant dense<0.000000e+00> : vector<8x256xf32>
    %17 = tpu.matmul %15, %16, %cst_12 {dimension_numbers = #tpu.dot_dimension_numbers<[1], [0], [0], [1], [0, 0, 1, 1], [], []>} : vector<8x256xbf16>, vector<256x256xbf16>, vector<8x256xf32> -> vector<8x256xf32>
    %18 = arith.truncf %17 : vector<8x256xf32> to vector<8x256xbf16>
    %c0_13 = arith.constant 0 : index
    %c0_14 = arith.constant 0 : index
    %19 = vector.load %arg7[%c0_13, %c0_14] : memref<1x256xbf16, #tpu.memory_space<vmem>>, vector<1x256xbf16>
    %20 = vector.broadcast %19 : vector<1x256xbf16> to vector<8x256xbf16>
    %21 = arith.addf %18, %20 : vector<8x256xbf16>
    %cst_15 = arith.constant 0.000000e+00 : bf16
    %22 = vector.broadcast %cst_15 : bf16 to vector<8x256xbf16>
    %23 = arith.maximumf %21, %22 : vector<8x256xbf16>
    %c0_16 = arith.constant 0 : index
    %c0_17 = arith.constant 0 : index
    %24 = vector.load %arg8[%c0_16, %c0_17] : memref<256x128xbf16, #tpu.memory_space<vmem>>, vector<256x128xbf16>
    %cst_18 = arith.constant dense<0.000000e+00> : vector<8x128xf32>
    %25 = tpu.matmul %23, %24, %cst_18 {dimension_numbers = #tpu.dot_dimension_numbers<[1], [0], [0], [1], [0, 0, 1, 1], [], []>} : vector<8x256xbf16>, vector<256x128xbf16>, vector<8x128xf32> -> vector<8x128xf32>
    %26 = vector.extract_strided_slice %25 {offsets = [0, 0], sizes = [8, 1], strides = [1, 1]} : vector<8x128xf32> to vector<8x1xf32>
    %c0_19 = arith.constant 0 : index
    %c0_20 = arith.constant 0 : index
    %27 = memref.load %arg9[%c0_19, %c0_20] : memref<1x1xf32, #tpu.memory_space<smem>>
    %28 = vector.broadcast %27 : f32 to vector<8x1xf32>
    %29 = arith.addf %26, %28 : vector<8x1xf32>
    %c0_21 = arith.constant 0 : index
    %c0_22 = arith.constant 0 : index
    %30 = vector.load %arg10[%c0_21, %c0_22] : memref<8x1xf32, #tpu.memory_space<vmem>>, vector<8x1xf32>
    tpu.vector_store %arg10[%c0_21, %c0_22], %29 {strides = array<i32>} : memref<8x1xf32, #tpu.memory_space<vmem>>, vector<8x1xf32>,
    return
  }
  func.func @transform_0(%arg0: i32) -> (i32, i32) {
    %c0_i32 = arith.constant 0 : i32
    %c0_i32_0 = arith.constant 0 : i32
    return %arg0, %c0_i32 : i32, i32
  }
  func.func @transform_1(%arg0: i32) -> (i32, i32) {
    %c0_i32 = arith.constant 0 : i32
    %c0_i32_0 = arith.constant 0 : i32
    return %arg0, %c0_i32 : i32, i32
  }
  func.func @transform_2(%arg0: i32) -> (i32, i32) {
    %c0_i32 = arith.constant 0 : i32
    %c0_i32_0 = arith.constant 0 : i32
    %c0_i32_1 = arith.constant 0 : i32
    return %c0_i32, %c0_i32_0 : i32, i32
  }
  func.func @transform_3(%arg0: i32) -> (i32, i32) {
    %c0_i32 = arith.constant 0 : i32
    %c0_i32_0 = arith.constant 0 : i32
    %c0_i32_1 = arith.constant 0 : i32
    return %c0_i32, %c0_i32_0 : i32, i32
  }
  func.func @transform_4(%arg0: i32) -> (i32, i32) {
    %c0_i32 = arith.constant 0 : i32
    %c0_i32_0 = arith.constant 0 : i32
    %c0_i32_1 = arith.constant 0 : i32
    return %c0_i32, %c0_i32_0 : i32, i32
  }
  func.func @transform_5(%arg0: i32) -> (i32, i32) {
    %c0_i32 = arith.constant 0 : i32
    %c0_i32_0 = arith.constant 0 : i32
    %c0_i32_1 = arith.constant 0 : i32
    return %c0_i32, %c0_i32_0 : i32, i32
  }
  func.func @transform_6(%arg0: i32) -> (i32, i32) {
    %c0_i32 = arith.constant 0 : i32
    %c0_i32_0 = arith.constant 0 : i32
    %c0_i32_1 = arith.constant 0 : i32
    return %c0_i32, %c0_i32_0 : i32, i32
  }
  func.func @transform_7(%arg0: i32) -> (i32, i32) {
    %c0_i32 = arith.constant 0 : i32
    %c0_i32_0 = arith.constant 0 : i32
    %c0_i32_1 = arith.constant 0 : i32
    return %c0_i32, %c0_i32_0 : i32, i32
  }
  func.func @transform_8(%arg0: i32) -> (i32, i32) {
    %c0_i32 = arith.constant 0 : i32
    %c0_i32_0 = arith.constant 0 : i32
    %c0_i32_1 = arith.constant 0 : i32
    return %c0_i32, %c0_i32_0 : i32, i32
  }
  func.func @transform_9(%arg0: i32) -> (i32, i32) {
    %c0_i32 = arith.constant 0 : i32
    %c0_i32_0 = arith.constant 0 : i32
    return %arg0, %c0_i32 : i32, i32
  }
}

</mosaic_0001>

<bundles_post_ra>
// kernel: tpu_custom_call.1
= control target key start
LH: loop header
LB: loop body
LE: loop exit
PB: predicated region body
PF: predicated region fallthrough
CT: control target
= control target key end

     0   :  { %15 = vsyncpa [#allocation4], 0  ;;  %s958_s0 = inlined_call_operand.vmem [shape: f32[8,3], index: 0, kind: input, shape index: {}]   ;;  %s959_s1 = inlined_call_operand.vmem [shape: f32[8,1], index: 1, kind: input, shape index: {}]   ;;  %s960_s2 = inlined_call_operand.vmem [shape: bf16[3,256], index: 2, kind: input, shape index: {}]   ;;  %s961_s3 = inlined_call_operand.vmem [shape: f32[1,256], index: 3, kind: input, shape index: {}]   ;;  %s962_s4 = inlined_call_operand.vmem [shape: bf16[1,256], index: 4, kind: input, shape index: {}]   ;;  %s963_s5 = inlined_call_operand.hbm [shape: bf16[256,256], index: 5, kind: input, shape index: {}]   ;;  %s964_s6 = inlined_call_operand.vmem [shape: bf16[1,256], index: 6, kind: input, shape index: {}]   ;;  %s965_s7 = inlined_call_operand.hbm [shape: bf16[256,128], index: 7, kind: input, shape index: {}]   ;;  %s966_s8 = inlined_call_operand.<no memory space> [shape: f32[1,1], index: 8, kind: input, shape index: {}]   ;;  %s967_s9 = inlined_call_operand.vmem [shape: f32[8,1], index: 9, kind: output, shape index: {}]  }
   0x1   :  { %16 = vsyncpa [#allocation6], 0  ;;  %s845_s30 = smov [#allocation3]   ;;  %s797_s13 = scalar_lea.hbm %s963_s5, 4096 }
   0x2   :  { %s32_s10 = sshll.u32 %s845_s30, 4  ;;  %p798_p0 = scmp.ne.s32.totalorder %s963_s5, %s797_s13  ;;  %s33_s10 = int_to_ptr.vmem [resolvable:$true] %s32_s10 }
   0x3   :  { %p801_p1 = scmp.lt.u32.totalorder %s797_s13, %s963_s5 }
   0x5   :  { %p803_p2 = pnand %p801_p1, %p798_p0 }
   0x7   :  { %806 = shalt.err (!%p803_p2)
}
   0x8   :  { %s807_s18 = scalar_lea.vmem %s33_s10, 4096  ;;  %p812_p4 = scmp.lt.s32.totalorder %s33_s10, %s33_s10 }
   0x9   :  { %p808_p3 = scmp.ne.s32.totalorder %s33_s10, %s807_s18  ;;  %p813_p5 = scmp.lt.s32.totalorder %s807_s18, %s807_s18 }
   0xb   :  { %p814_p6 = por %p813_p5, %p812_p4 }
   0xd   :  { %p815_p7 = pnand %p814_p6, %p808_p3 }
   0xf   :  { %818 = shalt.err (!%p815_p7)
}
  0x10   :  { %s846_s19 = smov 128   ;;  %s847_s20 = smov 8  }
  0x11   :  { %38 = dma.hbm_to_vmem [thread:$0]  %s963_s5, 4096, %s33_s10, [#allocation4], %s846_s19, %s846_s19, %s847_s20  }
  0x12   :  { %s848_s23 = smov [#allocation5]   ;;  %s819_s27 = scalar_lea.hbm %s965_s7, 2048 }
  0x13   :  { %s46_s24 = sshll.u32 %s848_s23, 4  ;;  %p820_p8 = scmp.ne.s32.totalorder %s965_s7, %s819_s27  ;;  %s47_s24 = int_to_ptr.vmem [resolvable:$true] %s46_s24 }
  0x14   :  { %p823_p9 = scmp.lt.u32.totalorder %s819_s27, %s965_s7 }
  0x16   :  { %p825_p10 = pnand %p823_p9, %p820_p8 }
  0x18   :  { %828 = shalt.err (!%p825_p10)
}
  0x19   :  { %s829_s12 = scalar_lea.vmem %s47_s24, 2048  ;;  %p834_p12 = scmp.lt.s32.totalorder %s47_s24, %s47_s24 }
  0x1a   :  { %p830_p11 = scmp.ne.s32.totalorder %s47_s24, %s829_s12  ;;  %p835_p13 = scmp.lt.s32.totalorder %s829_s12, %s829_s12 }
  0x1c   :  { %p836_p0 = por %p835_p13, %p834_p12 }
  0x1e   :  { %p837_p1 = pnand %p836_p0, %p830_p11 }
  0x20   :  { %840 = shalt.err (!%p837_p1)
}
  0x21   :  { %s849_s5 = smov 64   ;;  %s850_s10 = smov 4  }
  0x22   :  { %52 = dma.hbm_to_vmem [thread:$0]  %s965_s7, 2048, %s47_s24, [#allocation6], %s849_s5, %s849_s5, %s850_s10  }
  0x23   :  { %841 = dma.done.wait [#allocation4], 4096  }
  0x24   :  { %842 = vsyncadd [#allocation4], 4294963200 }
  0x25   :  { %843 = dma.done.wait [#allocation6], 2048  }
  0x26   :  { %844 = vsyncadd [#allocation6], 4294965248  ;;  %vm98_vm0 = vcmask 1040384   ;;  %v851_v0 = vmov 0   ;;  %vm99_vm1 = vcmask 1041408   ;;  %v852_v1 = vmov 65535  }
  0x27   :  { %140 = vmatprep.mubr.bf16.mxu0 %v851_v0  ;;  %732 = vset.pattern.permute.xlu0 %v851_v0  ;;  %v100_v2 = vsel %vm98_vm0, 4294967295, %v852_v1  ;;  %v649_v4 = vld.sshfl [vmem:[%s960_s2] sm:$0x33 pattern:$0x76325410]  ;;  %vm94_vm2 = vcmask 23552   ;;  %v73_v55 = vlaneseq }
  0x28   :  { %v101_v3 = vsel %vm99_vm1, %v100_v2, 0  ;;  %v62_v5 = vld [vmem:[%s958_s0] sm:$0xff]  ;;  %v93_v7 = vcombine.high %v649_v4, %v649_v4  ;;  %v736_v12 = vld [vmem:[#allocation3 + $0x14] ss:$8 sps:$4 sm:$0xff]   ;;  %v738_v13 = vld [vmem:[#allocation3 + $0x10] ss:$8 sps:$4 sm:$0xff]  }
  0x29   :  { %v65_v6 = vld [vmem:[%s959_s1] sm:$0xff]  ;;  %v103_v9 = vand.u32 %v649_v4, %v101_v3  ;;  %v63_v14 = vpack.c.bf16 %v62_v5, %v62_v5  ;;  %v742_v17 = vld [vmem:[#allocation3 + $0x34] ss:$8 sps:$4 sm:$0xff]   ;;  %v744_v18 = vld [vmem:[#allocation3 + $0x30] ss:$8 sps:$4 sm:$0xff]   ;;  %v74_v58 = vshrl.u32 %v73_v55, 7 }
  0x2a   :  { %69 = vperm.xlu0 %732, %v65_v6   ;;  %v733_v8 = vld [vmem:[#allocation3 + $0x4] ss:$8 sps:$4 sm:$0xff]   ;;  %v735_v10 = vld [vmem:[#allocation3] ss:$8 sps:$4 sm:$0xff]   ;;  %v106_v11 = vand.u32 %v101_v3, %v93_v7  ;;  %v748_v21 = vld [vmem:[#allocation3 + $0x54] ss:$8 sps:$4 sm:$0xff]  }
  0x2b   :  { %385 = vmatprep.subr.bf16.mxu1 %v733_v8  ;;  %v739_v15 = vld [vmem:[#allocation3 + $0x24] ss:$8 sps:$4 sm:$0xff]   ;;  %v741_v16 = vld [vmem:[#allocation3 + $0x20] ss:$8 sps:$4 sm:$0xff]   ;;  %v750_v22 = vld [vmem:[#allocation3 + $0x50] ss:$8 sps:$4 sm:$0xff]  }
  0x2c   :  { %386 = vmatpush1.bf16.msra.mxu1 %v735_v10  ;;  %108 = vmatprep.subr.bf16.mxu0 %v106_v11  ;;  %v745_v19 = vld [vmem:[#allocation3 + $0x44] ss:$8 sps:$4 sm:$0xff]   ;;  %v747_v20 = vld [vmem:[#allocation3 + $0x40] ss:$8 sps:$4 sm:$0xff]   ;;  %v754_v25 = vld [vmem:[#allocation3 + $0x74] ss:$8 sps:$4 sm:$0xff]  }
  0x2d   :  { %387 = vmatprep.subr.bf16.mxu1 %v736_v12  ;;  %109 = vmatpush1.bf16.msra.mxu0 %v103_v9  ;;  %v751_v23 = vld [vmem:[#allocation3 + $0x64] ss:$8 sps:$4 sm:$0xff]   ;;  %v753_v24 = vld [vmem:[#allocation3 + $0x60] ss:$8 sps:$4 sm:$0xff]   ;;  %v756_v26 = vld [vmem:[#allocation3 + $0x70] ss:$8 sps:$4 sm:$0xff]  }
  0x2e   :  { %v757_v27 = vld [vmem:[#allocation3 + $0x84] ss:$8 sps:$4 sm:$0xff]   ;;  %v759_v28 = vld [vmem:[#allocation3 + $0x80] ss:$8 sps:$4 sm:$0xff]   ;;  %v760_v29 = vld [vmem:[#allocation3 + $0x94] ss:$8 sps:$4 sm:$0xff]  }
  0x2f   :  { %v762_v30 = vld [vmem:[#allocation3 + $0x90] ss:$8 sps:$4 sm:$0xff]   ;;  %v763_v31 = vld [vmem:[#allocation3 + $0xa4] ss:$8 sps:$4 sm:$0xff]   ;;  %v765_v32 = vld [vmem:[#allocation3 + $0xa0] ss:$8 sps:$4 sm:$0xff]  }
  0x30   :  { %388 = vmatpush1.bf16.msra.mxu1 %v738_v13  ;;  %650 = vmatmul.mubr.msk.bf16.vlgmr.msra.gmra.mrb[0].mxu0 %vm94_vm2, %v63_v14  ;;  %v766_v33 = vld [vmem:[#allocation3 + $0xb4] ss:$8 sps:$4 sm:$0xff]   ;;  %v768_v34 = vld [vmem:[#allocation3 + $0xb0] ss:$8 sps:$4 sm:$0xff]   ;;  %v769_v35 = vld [vmem:[#allocation3 + $0xc4] ss:$8 sps:$4 sm:$0xff]  }
  0x31   :  { %389 = vmatprep.subr.bf16.mxu1 %v739_v15  ;;  %v771_v36 = vld [vmem:[#allocation3 + $0xc0] ss:$8 sps:$4 sm:$0xff]   ;;  %v772_v37 = vld [vmem:[#allocation3 + $0xd4] ss:$8 sps:$4 sm:$0xff]   ;;  %v774_v38 = vld [vmem:[#allocation3 + $0xd0] ss:$8 sps:$4 sm:$0xff]  }
  0x32   :  { %v775_v39 = vld [vmem:[#allocation3 + $0xe4] ss:$8 sps:$4 sm:$0xff]   ;;  %v777_v40 = vld [vmem:[#allocation3 + $0xe0] ss:$8 sps:$4 sm:$0xff]   ;;  %v778_v41 = vld [vmem:[#allocation3 + $0xf4] ss:$8 sps:$4 sm:$0xff]  }
  0x33   :  { %v780_v42 = vld [vmem:[#allocation3 + $0xf0] ss:$8 sps:$4 sm:$0xff]   ;;  %v781_v43 = vld [vmem:[#allocation5 + $0x40] sm:$0xff]   ;;  %v783_v45 = vld [vmem:[#allocation5 + $0x48] sm:$0xff]   ;;  %v853_v56 = vmov 1966171168  }
  0x34   :  { %390 = vmatpush1.bf16.msra.mxu1 %v741_v16  ;;  %v782_v44 = vld [vmem:[#allocation5] sm:$0xff]   ;;  %701 = vmatprep.subr.bf16.mxu0 %v781_v43  ;;  %v784_v46 = vld [vmem:[#allocation5 + $0x8] sm:$0xff]   ;;  %v785_v47 = vld [vmem:[#allocation5 + $0x50] sm:$0xff]   ;;  %v162_v57 = vunpack.c.l.s4 %v853_v56  ;;  %v75_v61 = vsub.s32 0, %v74_v58  ;;  %v79_v1 = vsub.s32 1, %v74_v58  ;;  %vm641_vm3 = vcmask 7168  }
  0x35   :  { %391 = vmatprep.subr.bf16.mxu1 %v742_v17  ;;  %702 = vmatpush3.bf16.msra.mxu0 %v782_v44  ;;  %v786_v48 = vld [vmem:[#allocation5 + $0x10] sm:$0xff]   ;;  %v787_v49 = vld [vmem:[#allocation5 + $0x58] sm:$0xff]   ;;  %v789_v51 = vld [vmem:[#allocation5 + $0x60] sm:$0xff]  }
  0x36   :  { %703 = vmatprep.subr.bf16.mxu0 %v783_v45  ;;  %v788_v50 = vld [vmem:[#allocation5 + $0x18] sm:$0xff]   ;;  %v790_v52 = vld [vmem:[#allocation5 + $0x20] sm:$0xff]   ;;  %v791_v53 = vld [vmem:[#allocation5 + $0x68] sm:$0xff]   ;;  %v163_v59 = vunpack.c.0.s8 %v162_v57 }
  0x37   :  { %v792_v54 = vld [vmem:[#allocation5 + $0x28] sm:$0xff]   ;;  %v651_v60 = vld.sshfl [vmem:[%s962_s4] sm:$0x11 pattern:$0x75316420] }
  0x38   :  { %392 = vmatpush1.bf16.msra.mxu1 %v744_v18  ;;  %v166_v62 = vsub.s32 %v163_v59, %v74_v58  ;;  %v66_v63 = vld [vmem:[%s961_s3] sm:$0x3]  ;;  %v160_v2 = vcombine.high %v651_v60, %v651_v60 }
  0x39   :  { %393 = vmatprep.subr.bf16.mxu1 %v745_v19  ;;  %704 = vmatpush3.bf16.msra.mxu0 %v784_v46  ;;  %v76_v3 = vrot.slane %v66_v63, %v75_v61  ;;  %v80_v5 = vrot.slane %v66_v63, %v79_v1 }
  0x3a   :  { %705 = vmatprep.subr.bf16.mxu0 %v785_v47  ;;  %v167_v4 = vrot.slane %v651_v60, %v166_v62  ;;  %v174_v7 = vrot.slane %v160_v2, %v166_v62 }
  0x3c   :  { %394 = vmatpush1.bf16.msra.mxu1 %v747_v20  ;;  %v176_v9 = vpack.i.b16 %v167_v4, %v167_v4  ;;  %v183_v11 = vpack.i.b16 %v174_v7, %v174_v7 }
  0x3d   :  { %395 = vmatprep.subr.bf16.mxu1 %v748_v21  ;;  %706 = vmatpush3.bf16.msra.mxu0 %v786_v48 }
  0x3e   :  { %707 = vmatprep.subr.bf16.mxu0 %v787_v49  ;;  %v181_v14 = vrot.slane %v176_v9, %v75_v61  ;;  %v188_v18 = vrot.slane %v183_v11, %v75_v61 }
  0x40   :  { %396 = vmatpush1.bf16.msra.mxu1 %v750_v22 }
  0x41   :  { %397 = vmatprep.subr.bf16.mxu1 %v751_v23  ;;  %708 = vmatpush3.bf16.msra.mxu0 %v788_v50  ;;  %v639_v50 = vstv %s966_s8 }
  0x42   :  { %709 = vmatprep.subr.bf16.mxu0 %v789_v51 }
  0x44   :  { %398 = vmatpush1.bf16.msra.mxu1 %v753_v24 }
  0x45   :  { %399 = vmatprep.subr.bf16.mxu1 %v754_v25  ;;  %710 = vmatpush3.bf16.msra.mxu0 %v790_v52 }
  0x46   :  { %711 = vmatprep.subr.bf16.mxu0 %v791_v53 }
  0x48   :  { %400 = vmatpush1.bf16.msra.mxu1 %v756_v26  ;;  %v793_v26 = vld [vmem:[#allocation5 + $0x70] sm:$0xff]  }
  0x49   :  { %401 = vmatprep.subr.bf16.mxu1 %v757_v27  ;;  %712 = vmatpush3.bf16.msra.mxu0 %v792_v54  ;;  %v794_v27 = vld [vmem:[#allocation5 + $0x30] sm:$0xff]  }
  0x4a   :  { %713 = vmatprep.subr.bf16.mxu0 %v793_v26 }
  0x4c   :  { %402 = vmatpush1.bf16.msra.mxu1 %v759_v28  ;;  %v795_v28 = vld [vmem:[#allocation5 + $0x78] sm:$0xff]  }
  0x4d   :  { %403 = vmatprep.subr.bf16.mxu1 %v760_v29  ;;  %714 = vmatpush3.bf16.msra.mxu0 %v794_v27  ;;  %v796_v29 = vld [vmem:[#allocation5 + $0x38] sm:$0xff]  }
  0x4e   :  { %715 = vmatprep.subr.bf16.mxu0 %v795_v28 }
  0x50   :  { %404 = vmatpush1.bf16.msra.mxu1 %v762_v30  ;;  %v684_v30 = vld.sshfl [vmem:[%s964_s6] sm:$0x11 pattern:$0x75316420] }
  0x51   :  { %405 = vmatprep.subr.bf16.mxu1 %v763_v31  ;;  %716 = vmatpush3.bf16.msra.mxu0 %v796_v29  ;;  %v437_v31 = vcombine.high %v684_v30, %v684_v30 }
  0x54   :  { %406 = vmatpush1.bf16.msra.mxu1 %v765_v32  ;;  %v444_v32 = vrot.slane %v684_v30, %v166_v62 }
  0x55   :  { %407 = vmatprep.subr.bf16.mxu1 %v766_v33  ;;  %v451_v33 = vrot.slane %v437_v31, %v166_v62 }
  0x58   :  { %408 = vmatpush1.bf16.msra.mxu1 %v768_v34  ;;  %v453_v34 = vpack.i.b16 %v444_v32, %v444_v32 }
  0x59   :  { %409 = vmatprep.subr.bf16.mxu1 %v769_v35  ;;  %v460_v35 = vpack.i.b16 %v451_v33, %v451_v33 }
  0x5c   :  { %410 = vmatpush1.bf16.msra.mxu1 %v771_v36  ;;  %v458_v36 = vrot.slane %v453_v34, %v75_v61 }
  0x5d   :  { %411 = vmatprep.subr.bf16.mxu1 %v772_v37 }
  0x60   :  { %412 = vmatpush1.bf16.msra.mxu1 %v774_v38  ;;  %v465_v38 = vrot.slane %v460_v35, %v75_v61 }
  0x61   :  { %413 = vmatprep.subr.bf16.mxu1 %v775_v39 }
  0x64   :  { %414 = vmatpush1.bf16.msra.mxu1 %v777_v40 }
  0x65   :  { %415 = vmatprep.subr.bf16.mxu1 %v778_v41 }
  0x68   :  { %416 = vmatpush1.bf16.msra.mxu1 %v780_v42 }
  0xa9   :  { %v70_v6 = vpop.permute.xlu0 %69 }
  0xaa   :  { %v83_v8 = vmul.f32 %v76_v3, %v70_v6  ;;  %v84_v10 = vmul.f32 %v80_v5, %v70_v6 }
 0x103   :  { %v142_v12 = vpop.f32.mrb[0].mxu0 }
 0x104   :  { %v143_v13 = vadd.f32 %v142_v12, %v83_v8  ;;  %v144_v15 = vpop.f32.mrb[1].mxu0 }
 0x105   :  { %v145_v16 = vadd.f32 %v144_v15, %v84_v10  ;;  %v146_v17 = vpop.f32.mrb[2].mxu0 }
 0x106   :  { %v149_v19 = vpack.c.bf16 %v143_v13, %v143_v13  ;;  %v147_v20 = vpop.f32.mrb[3].mxu0 }
 0x107   :  { %v150_v21 = vpack.c.bf16 %v145_v16, %v145_v16 }
 0x108   :  { %v189_v22 = vadd.bf16 %v181_v14, %v149_v19 }
 0x109   :  { %v190_v23 = vadd.bf16 %v188_v18, %v150_v21 }
 0x10a   :  { %v191_v25 = vmax.bf16 %v851_v0, %v189_v22 }
 0x10b   :  { %v192_v24 = vmax.bf16 %v851_v0, %v190_v23 }
 0x10d   :  { %417 = vmatprep.mubr.bf16.mxu1 %v192_v24 }
 0x10e   :  { %418 = vmatmul.mubr.bf16.vlgmr.msra.gmra.mrb[0].mxu1 %v191_v25 }
 0x1e1   :  { %v419_v37 = vpop.f32.mrb[0].mxu1 }
 0x1e2   :  { %v426_v39 = vpack.c.bf16 %v419_v37, %v419_v37  ;;  %v421_v40 = vpop.f32.mrb[1].mxu1 }
 0x1e3   :  { %v427_v41 = vpack.c.bf16 %v421_v40, %v421_v40  ;;  %v423_v42 = vpop.f32.mrb[2].mxu1 }
 0x1e4   :  { %v466_v43 = vadd.bf16 %v458_v36, %v426_v39  ;;  %v424_v44 = vpop.f32.mrb[3].mxu1 }
 0x1e5   :  { %v467_v45 = vadd.bf16 %v465_v38, %v427_v41 }
 0x1e6   :  { %v468_v47 = vmax.bf16 %v851_v0, %v466_v43 }
 0x1e7   :  { %v469_v46 = vmax.bf16 %v851_v0, %v467_v45 }
 0x1e9   :  { %630 = vmatprep.mubr.bf16.mxu0 %v469_v46 }
 0x1ea   :  { %631 = vmatmul.mubr.bf16.vlgmr.msra.gmra.mrb[4].mxu0 %v468_v47 }
 0x2bd   :  { %v717_v48 = vpop.f32.mrb[4].mxu0 }
 0x2be   :  { %v718_v49 = vpop.f32.mrb[5].mxu0 }
 0x2bf   :  { %v719_v51 = vadd.f32 %v718_v49, %v717_v48  ;;  %v720_v52 = vpop.f32.mrb[6].mxu0 }
 0x2c0   :  { %v721_v53 = vpop.f32.mrb[7].mxu0 }
 0x2c1   :  { %v640_v54 = vadd.f32 %v719_v51, %v639_v50 }
 0x2c3   :  { %642 = vst.msk [vmem:[%s967_s9] sm:$0xff] %vm641_vm3, %v640_v54 }
 0x2c4   :  { %647 = vsyncpa [#allocation4], 1 }
 0x2c5   :  { %648 = vsyncpa [#allocation6], 1 }

</bundles_post_ra>
